<compile_context>
chip_gen: v7x
topology: tpu7x:2x2x1
jax: 0.10.0
libtpu: 0.0.40
codegen_flags: <defaults>
</compile_context>

<pallas_src>
import jax
import jax.numpy as jnp
from jax.experimental import pallas as pl
from jax.experimental.pallas import tpu as pltpu

# Encoder / decoder layer sizes, matching the PyTorch module.
ENC_DIMS = [100, 50, 25, 10, 2]
DEC_DIMS = [2, 10, 25, 50, 100]
N_LAYERS = 8            # 4 encoder + 4 decoder linear layers
PAD = 128               # all weights / activations padded to 128 lanes
D_IN = ENC_DIMS[0]      # 100
D_ENC = ENC_DIMS[-1]    # 2
D_OUT = DEC_DIMS[-1]    # 100
_SUBLANE_ALIGN = 16     # works for both f32 (8) and packed bf16 (16)


def _round_up(n, m):
    return ((n + m - 1) // m) * m


def _autoencoder_kernel(x_ref, w_ref, b_ref, out_ref):
    """x_ref: (tb, 128); w_ref: (8, 128, 128); b_ref: (8, 1, 128); out_ref: (tb, 128).

    All padded lanes of x / weights / biases are zero, so padded lanes of every
    intermediate activation are exactly zero.
    """
    h = x_ref[...].astype(jnp.float32)                 # (tb, 128), cols 100:128 = 0

    enc = None
    for i in range(N_LAYERS):
        h = jnp.dot(h, w_ref[i], preferred_element_type=jnp.float32) + b_ref[i]
        if i == 3:
            # End of encoder: linear output (no activation). Data in cols [0:2].
            enc = h
        if i not in (3, 7):                            # ReLU after every layer
            h = jnp.maximum(h, 0.0)                    # except encoder/decoder out
    dec = h                                            # data in cols [0:100], rest 0

    # Pack a single lane-dense output slab:
    #   [ reconstruction (100) | encoded (2) | zeros (26) ]
    # `enc` is zero outside cols [0:2], `dec` is zero outside cols [0:100], so a
    # lane-roll + add places the code at columns 100:102 exactly.
    slab = dec + pltpu.roll(enc, shift=D_OUT, axis=1)
    out_ref[...] = slab.astype(out_ref.dtype)


def _pack_params(params):
    """Pack 8 weights into (8,128,128) and 8 biases into (8,1,128), zero-padded, f32."""
    enc_w, enc_b, dec_w, dec_b = params
    ws = list(enc_w) + list(dec_w)
    bs = list(enc_b) + list(dec_b)
    w_packed = jnp.stack([
        jnp.pad(w.astype(jnp.float32),
                ((0, PAD - w.shape[0]), (0, PAD - w.shape[1])))
        for w in ws])                                  # (8, 128, 128)
    b_packed = jnp.stack([
        jnp.pad(b.astype(jnp.float32), (0, PAD - b.shape[0]))[None, :]
        for b in bs])                                  # (8, 1, 128)
    return w_packed, b_packed


def autoencoder_forward(x, params, *, tile_b=512):
    """x: [B, 100] (float32 or bfloat16). Returns (encoded [B, 2], out [B, 100]).

    Outputs have the same dtype as x; compute is float32 throughout.
    """
    B, d_in = x.shape
    assert d_in == D_IN
    io_dtype = x.dtype

    # --- choose an effective batch tile -----------------------------------
    b_al = _round_up(max(B, _SUBLANE_ALIGN), _SUBLANE_ALIGN)
    tb = min(_round_up(tile_b, _SUBLANE_ALIGN), b_al)
    # Prefer >= 2 grid steps so the "parallel" axis can use both v7x TensorCores.
    if (b_al + tb - 1) // tb < 2 and b_al >= 2 * _SUBLANE_ALIGN:
        tb = _round_up(pl.cdiv(b_al, 2), _SUBLANE_ALIGN)
    grid_b = pl.cdiv(b_al, tb)
    b_pad = grid_b * tb

    # Pad batch to the grid and lanes to 128 in one shot: lane-dense input DMA
    # and uniform (tb,128)x(128,128) MXU matmuls with no in-kernel slicing.
    x_p = jnp.pad(x, ((0, b_pad - B), (0, PAD - D_IN)))

    w_packed, b_packed = _pack_params(params)

    # --- specs -------------------------------------------------------------
    in_specs = [
        pl.BlockSpec((tb, PAD), lambda i: (i, 0)),                # x tile
        pl.BlockSpec((N_LAYERS, PAD, PAD), lambda i: (0, 0, 0)),  # resident weights
        pl.BlockSpec((N_LAYERS, 1, PAD), lambda i: (0, 0, 0)),    # resident biases
    ]
    out_specs = pl.BlockSpec((tb, PAD), lambda i: (i, 0))
    out_shape = jax.ShapeDtypeStruct((b_pad, PAD), io_dtype)

    grid_spec = pltpu.PrefetchScalarGridSpec(
        num_scalar_prefetch=0,
        grid=(grid_b,),
        in_specs=in_specs,
        out_specs=out_specs,
    )

    itemsize_in = jnp.dtype(io_dtype).itemsize
    n_wparams = sum(a * b for a, b in zip(ENC_DIMS[:-1] + DEC_DIMS[:-1],
                                          ENC_DIMS[1:] + DEC_DIMS[1:]))
    cost = pl.CostEstimate(
        flops=2 * n_wparams * b_pad,
        transcendentals=0,
        bytes_accessed=(b_pad * (PAD + PAD) * itemsize_in
                        + int(w_packed.size) * 4 + int(b_packed.size) * 4),
    )

    fn = pl.pallas_call(
        _autoencoder_kernel,
        out_shape=out_shape,
        grid_spec=grid_spec,
        cost_estimate=cost,
        compiler_params=pltpu.CompilerParams(
            dimension_semantics=("parallel",)),
    )
    slab = fn(x_p, w_packed, b_packed)

    out = slab[:B, :D_OUT]
    encoded = slab[:B, D_OUT:D_OUT + D_ENC]
    return encoded, out


def init_params(key):
    """Deterministic PyTorch-style (Kaiming-uniform-ish) init.

    Weights are stored transposed relative to torch.nn.Linear:
    shape [in_features, out_features] so y = x @ W + b.
    """
    def make_layers(dims, key):
        ws, bs = [], []
        for d_in, d_out in zip(dims[:-1], dims[1:]):
            key, kw, kb = jax.random.split(key, 3)
            bound = 1.0 / jnp.sqrt(d_in)
            ws.append(jax.random.uniform(kw, (d_in, d_out), jnp.float32,
                                         -bound, bound))
            bs.append(jax.random.uniform(kb, (d_out,), jnp.float32,
                                         -bound, bound))
        return ws, bs, key

    enc_w, enc_b, key = make_layers(ENC_DIMS, key)
    dec_w, dec_b, key = make_layers(DEC_DIMS, key)
    return enc_w, enc_b, dec_w, dec_b


def reference_forward(x, params):
    """Plain-JAX reference for correctness checking (eval-mode dropout = id)."""
    enc_w, enc_b, dec_w, dec_b = params
    h = x.astype(jnp.float32)
    for i, (w, b) in enumerate(zip(enc_w, enc_b)):
        h = h @ w + b
        if i < len(enc_w) - 1:
            h = jnp.maximum(h, 0.0)
    encoded = h
    h = encoded
    for i, (w, b) in enumerate(zip(dec_w, dec_b)):
        h = h @ w + b
        if i < len(dec_w) - 1:
            h = jnp.maximum(h, 0.0)
    return encoded, h


if __name__ == "__main__":
    key = jax.random.PRNGKey(0)
    key, kx, kp = jax.random.split(key, 3)
    params = init_params(kp)

    # --- float32 path, ragged batch (exercises padding + 2-step grid) -------
    B = 37
    x = jax.random.normal(kx, (B, D_IN), jnp.float32)
    encoded, out = autoencoder_forward(x, params)
    encoded, out = jax.block_until_ready((encoded, out))
    ref_enc, ref_out = reference_forward(x, params)
    assert encoded.shape == (B, D_ENC) and out.shape == (B, D_OUT)
    assert jnp.allclose(encoded, ref_enc, atol=1e-4, rtol=1e-4)
    assert jnp.allclose(out, ref_out, atol=1e-4, rtol=1e-4)

    # --- bfloat16 I/O path (compute stays float32) --------------------------
    xb = x[:32].astype(jnp.bfloat16)
    enc_b16, out_b16 = autoencoder_forward(xb, params)
    enc_b16, out_b16 = jax.block_until_ready((enc_b16, out_b16))
    ref_enc_b, ref_out_b = reference_forward(xb.astype(jnp.float32), params)
    assert enc_b16.dtype == jnp.bfloat16 and out_b16.dtype == jnp.bfloat16
    assert jnp.allclose(enc_b16.astype(jnp.float32), ref_enc_b, atol=7e-2, rtol=7e-2)
    assert jnp.allclose(out_b16.astype(jnp.float32), ref_out_b, atol=7e-2, rtol=7e-2)

    print("KERNEL_OK")
</pallas_src>

<mosaic_0001>
module attributes {stable_mosaic.version = 11 : i64} {
  func.func @_autoencoder_kernel(%arg0: i32, %arg1: memref<32x128xf32, #tpu.memory_space<vmem>>, %arg2: memref<8x128x128xf32, #tpu.memory_space<vmem>>, %arg3: memref<8x1x128xf32, #tpu.memory_space<vmem>>, %arg4: memref<32x128xf32, #tpu.memory_space<vmem>>) attributes {dimension_semantics = [#tpu.dimension_semantics<parallel>], iteration_bounds = array<i64: 2>, scalar_prefetch = 0 : i64, scratch_operands = 0 : i64, tpu.core_type = #tpu.core_type<tc>, window_params = [{transform_indices = @transform_0, window_bounds = array<i64: 32, 128>}, {pipeline_mode = #tpu.pipeline_mode<synchronous>, transform_indices = @transform_1, window_bounds = array<i64: 8, 128, 128>}, {pipeline_mode = #tpu.pipeline_mode<synchronous>, transform_indices = @transform_2, window_bounds = array<i64: 8, 1, 128>}, {transform_indices = @transform_3, window_bounds = array<i64: 32, 128>}]} {
    %c0 = arith.constant 0 : index
    %c0_0 = arith.constant 0 : index
    %0 = vector.load %arg1[%c0, %c0_0] : memref<32x128xf32, #tpu.memory_space<vmem>>, vector<32x128xf32>
    %c0_1 = arith.constant 0 : index
    %c0_2 = arith.constant 0 : index
    %c0_3 = arith.constant 0 : index
    %1 = vector.load %arg2[%c0_1, %c0_2, %c0_3] : memref<8x128x128xf32, #tpu.memory_space<vmem>>, vector<1x128x128xf32>
    %2 = vector.shape_cast %1 : vector<1x128x128xf32> to vector<128x128xf32>
    %cst = arith.constant dense<0.000000e+00> : vector<32x128xf32>
    %3 = tpu.matmul %0, %2, %cst {dimension_numbers = #tpu.dot_dimension_numbers<[1], [0], [0], [1], [0, 0, 1, 1], [], []>} : vector<32x128xf32>, vector<128x128xf32>, vector<32x128xf32> -> vector<32x128xf32>
    %c0_4 = arith.constant 0 : index
    %c0_5 = arith.constant 0 : index
    %c0_6 = arith.constant 0 : index
    %4 = vector.load %arg3[%c0_4, %c0_5, %c0_6] : memref<8x1x128xf32, #tpu.memory_space<vmem>>, vector<1x1x128xf32>
    %5 = vector.shape_cast %4 : vector<1x1x128xf32> to vector<1x128xf32>
    %6 = vector.broadcast %5 : vector<1x128xf32> to vector<32x128xf32>
    %7 = arith.addf %3, %6 : vector<32x128xf32>
    %cst_7 = arith.constant 0.000000e+00 : f32
    %8 = vector.broadcast %cst_7 : f32 to vector<32x128xf32>
    %9 = arith.maximumf %7, %8 : vector<32x128xf32>
    %c1 = arith.constant 1 : index
    %c0_8 = arith.constant 0 : index
    %c0_9 = arith.constant 0 : index
    %10 = vector.load %arg2[%c1, %c0_8, %c0_9] : memref<8x128x128xf32, #tpu.memory_space<vmem>>, vector<1x128x128xf32>
    %11 = vector.shape_cast %10 : vector<1x128x128xf32> to vector<128x128xf32>
    %cst_10 = arith.constant dense<0.000000e+00> : vector<32x128xf32>
    %12 = tpu.matmul %9, %11, %cst_10 {dimension_numbers = #tpu.dot_dimension_numbers<[1], [0], [0], [1], [0, 0, 1, 1], [], []>} : vector<32x128xf32>, vector<128x128xf32>, vector<32x128xf32> -> vector<32x128xf32>
    %c1_11 = arith.constant 1 : index
    %c0_12 = arith.constant 0 : index
    %c0_13 = arith.constant 0 : index
    %13 = vector.load %arg3[%c1_11, %c0_12, %c0_13] : memref<8x1x128xf32, #tpu.memory_space<vmem>>, vector<1x1x128xf32>
    %14 = vector.shape_cast %13 : vector<1x1x128xf32> to vector<1x128xf32>
    %15 = vector.broadcast %14 : vector<1x128xf32> to vector<32x128xf32>
    %16 = arith.addf %12, %15 : vector<32x128xf32>
    %cst_14 = arith.constant 0.000000e+00 : f32
    %17 = vector.broadcast %cst_14 : f32 to vector<32x128xf32>
    %18 = arith.maximumf %16, %17 : vector<32x128xf32>
    %c2 = arith.constant 2 : index
    %c0_15 = arith.constant 0 : index
    %c0_16 = arith.constant 0 : index
    %19 = vector.load %arg2[%c2, %c0_15, %c0_16] : memref<8x128x128xf32, #tpu.memory_space<vmem>>, vector<1x128x128xf32>
    %20 = vector.shape_cast %19 : vector<1x128x128xf32> to vector<128x128xf32>
    %cst_17 = arith.constant dense<0.000000e+00> : vector<32x128xf32>
    %21 = tpu.matmul %18, %20, %cst_17 {dimension_numbers = #tpu.dot_dimension_numbers<[1], [0], [0], [1], [0, 0, 1, 1], [], []>} : vector<32x128xf32>, vector<128x128xf32>, vector<32x128xf32> -> vector<32x128xf32>
    %c2_18 = arith.constant 2 : index
    %c0_19 = arith.constant 0 : index
    %c0_20 = arith.constant 0 : index
    %22 = vector.load %arg3[%c2_18, %c0_19, %c0_20] : memref<8x1x128xf32, #tpu.memory_space<vmem>>, vector<1x1x128xf32>
    %23 = vector.shape_cast %22 : vector<1x1x128xf32> to vector<1x128xf32>
    %24 = vector.broadcast %23 : vector<1x128xf32> to vector<32x128xf32>
    %25 = arith.addf %21, %24 : vector<32x128xf32>
    %cst_21 = arith.constant 0.000000e+00 : f32
    %26 = vector.broadcast %cst_21 : f32 to vector<32x128xf32>
    %27 = arith.maximumf %25, %26 : vector<32x128xf32>
    %c3 = arith.constant 3 : index
    %c0_22 = arith.constant 0 : index
    %c0_23 = arith.constant 0 : index
    %28 = vector.load %arg2[%c3, %c0_22, %c0_23] : memref<8x128x128xf32, #tpu.memory_space<vmem>>, vector<1x128x128xf32>
    %29 = vector.shape_cast %28 : vector<1x128x128xf32> to vector<128x128xf32>
    %cst_24 = arith.constant dense<0.000000e+00> : vector<32x128xf32>
    %30 = tpu.matmul %27, %29, %cst_24 {dimension_numbers = #tpu.dot_dimension_numbers<[1], [0], [0], [1], [0, 0, 1, 1], [], []>} : vector<32x128xf32>, vector<128x128xf32>, vector<32x128xf32> -> vector<32x128xf32>
    %c3_25 = arith.constant 3 : index
    %c0_26 = arith.constant 0 : index
    %c0_27 = arith.constant 0 : index
    %31 = vector.load %arg3[%c3_25, %c0_26, %c0_27] : memref<8x1x128xf32, #tpu.memory_space<vmem>>, vector<1x1x128xf32>
    %32 = vector.shape_cast %31 : vector<1x1x128xf32> to vector<1x128xf32>
    %33 = vector.broadcast %32 : vector<1x128xf32> to vector<32x128xf32>
    %34 = arith.addf %30, %33 : vector<32x128xf32>
    %c4 = arith.constant 4 : index
    %c0_28 = arith.constant 0 : index
    %c0_29 = arith.constant 0 : index
    %35 = vector.load %arg2[%c4, %c0_28, %c0_29] : memref<8x128x128xf32, #tpu.memory_space<vmem>>, vector<1x128x128xf32>
    %36 = vector.shape_cast %35 : vector<1x128x128xf32> to vector<128x128xf32>
    %cst_30 = arith.constant dense<0.000000e+00> : vector<32x128xf32>
    %37 = tpu.matmul %34, %36, %cst_30 {dimension_numbers = #tpu.dot_dimension_numbers<[1], [0], [0], [1], [0, 0, 1, 1], [], []>} : vector<32x128xf32>, vector<128x128xf32>, vector<32x128xf32> -> vector<32x128xf32>
    %c4_31 = arith.constant 4 : index
    %c0_32 = arith.constant 0 : index
    %c0_33 = arith.constant 0 : index
    %38 = vector.load %arg3[%c4_31, %c0_32, %c0_33] : memref<8x1x128xf32, #tpu.memory_space<vmem>>, vector<1x1x128xf32>
    %39 = vector.shape_cast %38 : vector<1x1x128xf32> to vector<1x128xf32>
    %40 = vector.broadcast %39 : vector<1x128xf32> to vector<32x128xf32>
    %41 = arith.addf %37, %40 : vector<32x128xf32>
    %cst_34 = arith.constant 0.000000e+00 : f32
    %42 = vector.broadcast %cst_34 : f32 to vector<32x128xf32>
    %43 = arith.maximumf %41, %42 : vector<32x128xf32>
    %c5 = arith.constant 5 : index
    %c0_35 = arith.constant 0 : index
    %c0_36 = arith.constant 0 : index
    %44 = vector.load %arg2[%c5, %c0_35, %c0_36] : memref<8x128x128xf32, #tpu.memory_space<vmem>>, vector<1x128x128xf32>
    %45 = vector.shape_cast %44 : vector<1x128x128xf32> to vector<128x128xf32>
    %cst_37 = arith.constant dense<0.000000e+00> : vector<32x128xf32>
    %46 = tpu.matmul %43, %45, %cst_37 {dimension_numbers = #tpu.dot_dimension_numbers<[1], [0], [0], [1], [0, 0, 1, 1], [], []>} : vector<32x128xf32>, vector<128x128xf32>, vector<32x128xf32> -> vector<32x128xf32>
    %c5_38 = arith.constant 5 : index
    %c0_39 = arith.constant 0 : index
    %c0_40 = arith.constant 0 : index
    %47 = vector.load %arg3[%c5_38, %c0_39, %c0_40] : memref<8x1x128xf32, #tpu.memory_space<vmem>>, vector<1x1x128xf32>
    %48 = vector.shape_cast %47 : vector<1x1x128xf32> to vector<1x128xf32>
    %49 = vector.broadcast %48 : vector<1x128xf32> to vector<32x128xf32>
    %50 = arith.addf %46, %49 : vector<32x128xf32>
    %cst_41 = arith.constant 0.000000e+00 : f32
    %51 = vector.broadcast %cst_41 : f32 to vector<32x128xf32>
    %52 = arith.maximumf %50, %51 : vector<32x128xf32>
    %c6 = arith.constant 6 : index
    %c0_42 = arith.constant 0 : index
    %c0_43 = arith.constant 0 : index
    %53 = vector.load %arg2[%c6, %c0_42, %c0_43] : memref<8x128x128xf32, #tpu.memory_space<vmem>>, vector<1x128x128xf32>
    %54 = vector.shape_cast %53 : vector<1x128x128xf32> to vector<128x128xf32>
    %cst_44 = arith.constant dense<0.000000e+00> : vector<32x128xf32>
    %55 = tpu.matmul %52, %54, %cst_44 {dimension_numbers = #tpu.dot_dimension_numbers<[1], [0], [0], [1], [0, 0, 1, 1], [], []>} : vector<32x128xf32>, vector<128x128xf32>, vector<32x128xf32> -> vector<32x128xf32>
    %c6_45 = arith.constant 6 : index
    %c0_46 = arith.constant 0 : index
    %c0_47 = arith.constant 0 : index
    %56 = vector.load %arg3[%c6_45, %c0_46, %c0_47] : memref<8x1x128xf32, #tpu.memory_space<vmem>>, vector<1x1x128xf32>
    %57 = vector.shape_cast %56 : vector<1x1x128xf32> to vector<1x128xf32>
    %58 = vector.broadcast %57 : vector<1x128xf32> to vector<32x128xf32>
    %59 = arith.addf %55, %58 : vector<32x128xf32>
    %cst_48 = arith.constant 0.000000e+00 : f32
    %60 = vector.broadcast %cst_48 : f32 to vector<32x128xf32>
    %61 = arith.maximumf %59, %60 : vector<32x128xf32>
    %c7 = arith.constant 7 : index
    %c0_49 = arith.constant 0 : index
    %c0_50 = arith.constant 0 : index
    %62 = vector.load %arg2[%c7, %c0_49, %c0_50] : memref<8x128x128xf32, #tpu.memory_space<vmem>>, vector<1x128x128xf32>
    %63 = vector.shape_cast %62 : vector<1x128x128xf32> to vector<128x128xf32>
    %cst_51 = arith.constant dense<0.000000e+00> : vector<32x128xf32>
    %64 = tpu.matmul %61, %63, %cst_51 {dimension_numbers = #tpu.dot_dimension_numbers<[1], [0], [0], [1], [0, 0, 1, 1], [], []>} : vector<32x128xf32>, vector<128x128xf32>, vector<32x128xf32> -> vector<32x128xf32>
    %c7_52 = arith.constant 7 : index
    %c0_53 = arith.constant 0 : index
    %c0_54 = arith.constant 0 : index
    %65 = vector.load %arg3[%c7_52, %c0_53, %c0_54] : memref<8x1x128xf32, #tpu.memory_space<vmem>>, vector<1x1x128xf32>
    %66 = vector.shape_cast %65 : vector<1x1x128xf32> to vector<1x128xf32>
    %67 = vector.broadcast %66 : vector<1x128xf32> to vector<32x128xf32>
    %68 = arith.addf %64, %67 : vector<32x128xf32>
    %c100_i32 = arith.constant 100 : i32
    %69 = tpu.dynamic_rotate %34 by %c100_i32 dim 1 : vector<32x128xf32>, i32 -> vector<32x128xf32>
    %70 = arith.addf %68, %69 : vector<32x128xf32>
    %c0_55 = arith.constant 0 : index
    %c0_56 = arith.constant 0 : index
    %71 = vector.load %arg4[%c0_55, %c0_56] : memref<32x128xf32, #tpu.memory_space<vmem>>, vector<32x128xf32>
    tpu.vector_store %arg4[%c0_55, %c0_56], %70 {strides = array<i32>} : memref<32x128xf32, #tpu.memory_space<vmem>>, vector<32x128xf32>,
    return
  }
  func.func @transform_0(%arg0: i32) -> (i32, i32) {
    %c0_i32 = arith.constant 0 : i32
    %c0_i32_0 = arith.constant 0 : i32
    return %arg0, %c0_i32 : i32, i32
  }
  func.func @transform_1(%arg0: i32) -> (i32, i32, i32) {
    %c0_i32 = arith.constant 0 : i32
    %c0_i32_0 = arith.constant 0 : i32
    %c0_i32_1 = arith.constant 0 : i32
    %c0_i32_2 = arith.constant 0 : i32
    return %c0_i32, %c0_i32_0, %c0_i32_1 : i32, i32, i32
  }
  func.func @transform_2(%arg0: i32) -> (i32, i32, i32) {
    %c0_i32 = arith.constant 0 : i32
    %c0_i32_0 = arith.constant 0 : i32
    %c0_i32_1 = arith.constant 0 : i32
    %c0_i32_2 = arith.constant 0 : i32
    return %c0_i32, %c0_i32_0, %c0_i32_1 : i32, i32, i32
  }
  func.func @transform_3(%arg0: i32) -> (i32, i32) {
    %c0_i32 = arith.constant 0 : i32
    %c0_i32_0 = arith.constant 0 : i32
    return %arg0, %c0_i32 : i32, i32
  }
}

</mosaic_0001>

<bundles_post_ra>
// kernel: tpu_custom_call.1
= control target key start
LH: loop header
LB: loop body
LE: loop exit
PB: predicated region body
PF: predicated region fallthrough
CT: control target
= control target key end

     0   :  { %8 = vsyncpa [#allocation3], 0  ;;  %s2509_s0 = inlined_call_operand.hbm [shape: f32[64,128], index: 0, kind: input, shape index: {}]   ;;  %s2510_s1 = inlined_call_operand.hbm [shape: f32[8,128,128], index: 1, kind: input, shape index: {}]   ;;  %s2511_s2 = inlined_call_operand.hbm [shape: f32[8,1,128], index: 2, kind: input, shape index: {}]   ;;  %s2512_s3 = inlined_call_operand.hbm [shape: f32[64,128], index: 3, kind: output, shape index: {}]  }
   0x1   :  { %10 = vsyncpa [#allocation3 + $0x1], 0 }
   0x2   :  { %11 = vsyncpa [#allocation6], 0 }
   0x3   :  { %12 = vsyncpa [#allocation4], 0 }
   0x4   :  { %14 = vsyncpa [#allocation4 + $0x1], 0  ;;  %s2259_s12 = smov 0   ;;  %s2261_s13 = smov 0  }
   0x5   :  { %s2263_s14 = smov 0   ;;  %s2265_s15 = smov 0  }
   0x6 LB: > { %s2280_s16 = sadd.s32 4294967295, %s2226_s15   ;;  %s1248_s17 = sadd.s32 4294967294, %s2226_s15   ;;  %s2226_s15 = sphi %s2265_s15, %s2532_s15   ;;  %s2222_s14 = sphi %s2263_s14, %s2531_s14   ;;  %s2218_s13 = sphi %s2261_s13, %s2530_s13   ;;  %s2214_s12 = sphi %s2259_s12, %s2529_s12  }
   0x7   : > { %p40_p0 = scmp.ne.s32.totalorder %s2218_s13, %s2214_s12  ;;  %p2513_p1 = scmp.eq.s32.totalorder %s2280_s16, 0 }
   0x8   : > { %p112_p3 = scmp.eq.s32.totalorder %s1248_s17, 1  ;;  %p1249_p5 = scmp.ge.s32.totalorder %s2226_s15, 1 }
   0x9   : > { %p2289_p4 = por %p2513_p1, %p40_p0  ;;  %p119_p7 = scmp.lt.s32.totalorder %s2226_s15, 3 }
   0xa   : > { %p2294_p6 = por %p112_p3, %p40_p0  ;;  %s2228_s21 = smov [#allocation5]  }
   0xb   : > { %s2516_s18 = scalar_select %p2289_p4, 1, 0 }
   0xc   : > { %s2517_s19 = scalar_select %p2294_p6, 1, 0 }
   0xd   : > { %p2299_p8 = pnand %p1249_p5, %p119_p7  ;;  %s131_s22 = sshll.u32 %s2228_s21, 4  ;;  %s2303_s22 = int_to_ptr.vmem [resolvable:$true] %s131_s22 }
   0xe   : > { %s2229_s24 = smov [#allocation7]   ;;  %s2070_s28 = scalar_lea.hbm %s2510_s1, 16384 }
   0xf   : > { %p2008_p9 = pneg %p2299_p8  ;;  %s144_s25 = sshll.u32 %s2229_s24, 4  ;;  %s2314_s25 = int_to_ptr.vmem [resolvable:$true] %s144_s25 }
  0x10   : > { %p2071_p12 = scmp.ne.s32.totalorder %s2510_s1, %s2070_s28  ;;  %p2077_p5 = scmp.lt.u32.totalorder %s2070_s28, %s2510_s1 }
  0x11   : > { %p2310_p11 = pnand %p2008_p9, %p2513_p1 }
  0x13   : > { %p2072_p13 = pneg %p2310_p11 }
  0x15   : > { %p2073_p0 = pnand %p2072_p13, %p2071_p12 }
  0x17   : > { %p2074_p3 = pneg %p2073_p0 }
  0x19   : > { %p2079_p7 = pnand %p2077_p5, %p2074_p3 }
  0x1b   : > { %2082 = shalt.err (!%p2079_p7)
}
  0x1c   : > { %s2083_s6 = scalar_lea.vmem %s2303_s22, 16384  ;;  %p2091_p2 = scmp.lt.s32.totalorder %s2303_s22, %s2303_s22 }
  0x1d   : > { %p2084_p9 = scmp.ne.s32.totalorder %s2303_s22, %s2083_s6  ;;  %p2092_p12 = scmp.lt.s32.totalorder %s2083_s6, %s2083_s6 }
  0x1f   : > { %p2086_p10 = pnand %p2084_p9, %p2072_p13  ;;  %p2093_p0 = por %p2092_p12, %p2091_p2 }
  0x21   : > { %p2087_p1 = pneg %p2086_p10 }
  0x23   : > { %p2094_p6 = pnand %p2093_p0, %p2087_p1 }
  0x25   : > { %2097 = shalt.err (!%p2094_p6)
}
  0x26   : > { %s2230_s7 = smov 128   ;;  %s2231_s8 = smov 8  }
  0x27   : > { %2011 = dma.hbm_to_vmem [thread:$0]  (!%p2310_p11), %s2510_s1, 16384, %s2303_s22, [#allocation6], %s2230_s7, %s2230_s7, %s2231_s8  }
  0x28   : > { %s2098_s21 = scalar_lea.hbm %s2511_s2, 128 }
  0x29   : > { %p2099_p1 = scmp.ne.s32.totalorder %s2511_s2, %s2098_s21  ;;  %p2105_p10 = scmp.lt.u32.totalorder %s2098_s21, %s2511_s2 }
  0x2b   : > { %p2101_p2 = pnand %p2099_p1, %p2072_p13 }
  0x2d   : > { %p2102_p6 = pneg %p2101_p2 }
  0x2f   : > { %p2107_p3 = pnand %p2105_p10, %p2102_p6 }
  0x31   : > { %2110 = shalt.err (!%p2107_p3)
}
  0x32   : > { %s2111_s22 = scalar_lea.vmem %s2314_s25, 128  ;;  %p2119_p12 = scmp.lt.s32.totalorder %s2314_s25, %s2314_s25 }
  0x33   : > { %p2112_p5 = scmp.ne.s32.totalorder %s2314_s25, %s2111_s22  ;;  %p2120_p0 = scmp.lt.s32.totalorder %s2111_s22, %s2111_s22 }
  0x35   : > { %p2114_p7 = pnand %p2112_p5, %p2072_p13  ;;  %p2121_p1 = por %p2120_p0, %p2119_p12 }
  0x37   : > { %p2115_p9 = pneg %p2114_p7 }
  0x39   : > { %p2122_p2 = pnand %p2121_p1, %p2115_p9 }
  0x3b   : > { %2125 = shalt.err (!%p2122_p2)
}
  0x3c   : > { %s2232_s29 = smov 16   ;;  %s2233_s30 = smov 1  }
  0x3d   : > { %2014 = dma.hbm_to_vmem [thread:$0]  (!%p2310_p11), %s2511_s2, 128, %s2314_s25, [#allocation6], %s2232_s29, %s2232_s29, %s2233_s30  }
  0x3e   : > { %s2372_s6 = sadd.s32 1, %s2226_s15   ;;  %s27_s10 = sadd.s32 1, %s2222_s14 }
  0x3f   : > { %s24_s9 = ssub.s32 %s2226_s15, %s2372_s6  ;;  %p34_p6 = scmp.ne.s32.totalorder %s2222_s14, %s2218_s13 }
  0x40   : > { %p25_p13 = scmp.eq.s32.totalorder %s24_s9, 0  ;;  %p35_p10 = scmp.eq.s32.totalorder %s2226_s15, 0 }
  0x41   : > { %p2520_p5 = scmp.eq.s32.totalorder %s2280_s16, 1  ;;  %p2025_p9 = scmp.lt.s32.totalorder %s2226_s15, 2 }
  0x42   : > { %s2381_s11 = scalar_select %p25_p13, %s2222_s14, %s27_s10  }
  0x43   : > { %p36_p3 = por %p35_p10, %p34_p6  ;;  %p2385_p7 = por %p2520_p5, %p34_p6 }
  0x44   : > { %s158_s23 = sand.u32 1, %s2222_s14   ;;  %s1274_s25 = sshll.u32 %s2226_s15, 9 }
  0x45   : > { %s2521_s17 = scalar_select %p2385_p7, 1, 0 }
  0x46   : > { %s1253_s21 = sshll.u32 %s158_s23, 5  ;;  %s2395_s27 = scalar_lea.hbm %s2509_s0, %s1274_s25 }
  0x47   : > { %s162_s28 = scalar_lea.vmem [#allocation2], %s1253_s21  ;;  %p2399_p11 = pnand %p2025_p9, %p36_p3 }
  0x48   : > { %s169_s22 = sshll.u32 %s162_s28, 4  ;;  %s2403_s30 = scalar_lea.sflag [#allocation3], %s158_s23  ;;  %s2397_s22 = int_to_ptr.vmem [resolvable:$true] %s169_s22 }
  0x49   : > { %s2126_s4 = scalar_lea.hbm %s2395_s27, 512  ;;  %p2128_p0 = pneg %p2399_p11 }
  0x4a   : > { %p2127_p12 = scmp.ne.s32.totalorder %s2395_s27, %s2126_s4  ;;  %s2131_s10 = scalar_lea.hbm %s2509_s0, 1024 }
  0x4b   : > { %p2132_p13 = scmp.lt.u32.totalorder %s2395_s27, %s2509_s0  ;;  %p2133_p6 = scmp.lt.u32.totalorder %s2131_s10, %s2126_s4 }
  0x4c   : > { %p2129_p1 = pnand %p2128_p0, %p2127_p12  ;;  %p2135_p3 = scmp.lt.u32.totalorder %s2126_s4, %s2395_s27 }
  0x4d   : > { %p2134_p10 = por %p2133_p6, %p2132_p13 }
  0x4e   : > { %p2130_p2 = pneg %p2129_p1 }
  0x4f   : > { %p2136_p5 = por %p2135_p3, %p2134_p10 }
  0x51   : > { %p2137_p9 = pnand %p2136_p5, %p2130_p2 }
  0x53   : > { %2140 = shalt.err (!%p2137_p9)
}
  0x54   : > { %s2141_s23 = scalar_lea.vmem %s2397_s22, 512  ;;  %s2234_s24 = smov [#allocation2]  }
  0x55   : > { %p2142_p12 = scmp.ne.s32.totalorder %s2397_s22, %s2141_s23  ;;  %s2146_s26 = sshll.u32 %s2234_s24, 4  ;;  %s2147_s26 = int_to_ptr.vmem [resolvable:$false] %s2146_s26 }
  0x56   : > { %s2148_s28 = scalar_lea.vmem %s2147_s26, 1024  ;;  %p2149_p4 = scmp.lt.s32.totalorder %s2397_s22, %s2147_s26 }
  0x57   : > { %p2144_p1 = pnand %p2142_p12, %p2128_p0  ;;  %p2150_p13 = scmp.lt.s32.totalorder %s2148_s28, %s2141_s23 }
  0x59   : > { %p2145_p7 = pneg %p2144_p1  ;;  %p2151_p6 = por %p2150_p13, %p2149_p4 }
  0x5b   : > { %p2152_p10 = pnand %p2151_p6, %p2145_p7 }
  0x5d   : > { %2155 = shalt.err (!%p2152_p10)
}
  0x5e   : > { %2018 = dma.hbm_to_vmem [thread:$0]  (!%p2399_p11), %s2395_s27, 512, %s2397_s22, %s2403_s30, %s2230_s7, %s2230_s7, %s2231_s8  }
  0x5f   : > { %181 = sbr.rel (%p2299_p8) target bundleno = 1902 (0x76e), region = 32  ;;  %s2437_s4 = sand.u32 (!%p2299_p8), 1, %s2218_s13  }
  0x60   : > { %s1257_s5 = sshll.u32 (!%p2299_p8), %s2437_s4, 5  ;;  %s184_s9 = scalar_lea.sflag (!%p2299_p8), [#allocation3], %s2437_s4 }
  0x61   : > { %s2443_s29 = scalar_lea.vmem (!%p2299_p8), [#allocation2], %s1257_s5  ;;  %p2523_p4 = scmp.ne.s32.totalorder (!%p2299_p8), %s2516_s18, 0 }
  0x66   : > { %2201 = dma.done.wait (%p2523_p4), %s184_s9, 512  }
  0x67   : > { %2203 = vsyncadd (%p2523_p4), %s184_s9, 4294966784  ;;  %p2524_p7 = scmp.eq.s32.totalorder %s2280_s16, 0 }
  0x69   : > { %2205 = dma.done.wait (%p2524_p7), [#allocation6], 16512   ;;  %p2525_p8 = pmov %p2524_p7 }
  0x6a   : > { %v224_v0 = vld [vmem:[#allocation5] sm:$0xff]  ;;  %v225_v1 = vld [vmem:[#allocation5 + $0x8] sm:$0xff]  ;;  %v226_v2 = vld [vmem:[#allocation5 + $0x10] sm:$0xff]  ;;  %s2235_s18 = smov 100   ;;  %s217_s20 = scalar_lea.vmem [#allocation8], %s1257_s5 }
  0x6b   : > { %2207 = vsyncadd (%p2525_p8), [#allocation6], 4294950784  ;;  %v1740_v3 = vpack.c.bf16 %v225_v1, %v224_v0  ;;  %v227_v4 = vld [vmem:[#allocation5 + $0x18] sm:$0xff]  ;;  %v228_v6 = vld [vmem:[#allocation5 + $0x20] sm:$0xff]  ;;  %s1156_s7 = sshll.u32 %s217_s20, 4  ;;  %s1275_s8 = sshll.u32 %s2280_s16, 9  ;;  %s2460_s7 = int_to_ptr.vmem [resolvable:$true] %s1156_s7 }
  0x6c   : > { %v1744_v5 = vpack.c.bf16 %v227_v4, %v226_v2  ;;  %v229_v7 = vld [vmem:[#allocation5 + $0x28] sm:$0xff]  ;;  %v220_v9 = vld [vmem:[%s2443_s29] sm:$0xff]  ;;  %v230_v10 = vld [vmem:[#allocation5 + $0x30] sm:$0xff]  ;;  %s2465_s30 = scalar_lea.hbm %s2512_s3, %s1275_s8  ;;  %s1143_s16 = scalar_lea.sflag [#allocation4], %s2437_s4 }
  0x6d   : > { %1741 = vmatprep.subr.bf16.mxu0 %v1740_v3  ;;  %v1748_v8 = vpack.c.bf16 %v229_v7, %v228_v6  ;;  %v231_v11 = vld [vmem:[#allocation5 + $0x38] sm:$0xff]  ;;  %1468 = vmatprep.mubr.f32.mxu0 %v220_v9  ;;  %v337_v12 = vld [vmem:[#allocation5 + $0x80] sm:$0xff]  ;;  %v338_v13 = vld [vmem:[#allocation5 + $0x88] sm:$0xff]  ;;  %s2156_s10 = scalar_lea.vmem %s2460_s7, 512  ;;  %p2526_p0 = scmp.ne.s32.totalorder %s2521_s17, 0 }
  0x6e   : > { %1743 = vmatpush3.bf16.msra.mxu0 %v1740_v3  ;;  %v339_v14 = vld [vmem:[#allocation5 + $0x90] sm:$0xff]  ;;  %v340_v15 = vld [vmem:[#allocation5 + $0x98] sm:$0xff]  ;;  %v1772_v16 = vpack.c.bf16 %v338_v13, %v337_v12  ;;  %v1752_v18 = vpack.c.bf16 %v231_v11, %v230_v10  ;;  %v341_v19 = vld [vmem:[#allocation5 + $0xa0] sm:$0xff]  ;;  %p2157_p11 = scmp.ne.s32.totalorder %s2460_s7, %s2156_s10  ;;  %s2236_s21 = smov [#allocation8]  }
  0x6f   : > { %1745 = vmatprep.subr.bf16.mxu0 %v1744_v5  ;;  %v1776_v17 = vpack.c.bf16 %v340_v15, %v339_v14  ;;  %v342_v20 = vld [vmem:[#allocation5 + $0xa8] sm:$0xff]  ;;  %v232_v21 = vld [vmem:[#allocation5 + $0x40] sm:$0xff]  ;;  %v343_v25 = vld [vmem:[#allocation5 + $0xb0] sm:$0xff]  ;;  %s2160_s25 = sshll.u32 %s2236_s21, 4  ;;  %s2161_s25 = int_to_ptr.vmem [resolvable:$false] %s2160_s25 }
  0x70   : > { %v233_v22 = vld [vmem:[#allocation5 + $0x48] sm:$0xff]  ;;  %1773 = vmatprep.subr.bf16.mxu1 %v1772_v16  ;;  %v1780_v23 = vpack.c.bf16 %v342_v20, %v341_v19  ;;  %v344_v26 = vld [vmem:[#allocation5 + $0xb8] sm:$0xff]  ;;  %v234_v27 = vld [vmem:[#allocation5 + $0x50] sm:$0xff]  ;;  %p2158_p2 = pnand %p2157_p11, %p2526_p0  ;;  %s2162_s23 = scalar_lea.vmem %s2161_s25, 1024 }
  0x71   : > { %1775 = vmatpush3.bf16.msra.mxu1 %v1772_v16  ;;  %v1756_v24 = vpack.c.bf16 %v233_v22, %v232_v21  ;;  %v235_v28 = vld [vmem:[#allocation5 + $0x58] sm:$0xff]  ;;  %v1784_v29 = vpack.c.bf16 %v344_v26, %v343_v25  ;;  %v345_v31 = vld [vmem:[#allocation5 + $0xc0] sm:$0xff]  ;;  %v346_v32 = vld [vmem:[#allocation5 + $0xc8] sm:$0xff]  ;;  %p2163_p5 = scmp.lt.s32.totalorder %s2460_s7, %s2161_s25  ;;  %p2164_p9 = scmp.lt.s32.totalorder %s2162_s23, %s2156_s10 }
  0x72   : > { %1747 = vmatpush3.bf16.msra.mxu0 %v1744_v5  ;;  %1777 = vmatprep.subr.bf16.mxu1 %v1776_v17  ;;  %v1760_v30 = vpack.c.bf16 %v235_v28, %v234_v27  ;;  %v236_v33 = vld [vmem:[#allocation5 + $0x60] sm:$0xff]  ;;  %v237_v34 = vld [vmem:[#allocation5 + $0x68] sm:$0xff]  ;;  %v1788_v35 = vpack.c.bf16 %v346_v32, %v345_v31  ;;  %v347_v37 = vld [vmem:[#allocation5 + $0xd0] sm:$0xff]  ;;  %p2159_p3 = pneg %p2158_p2 }
  0x73   : > { %1749 = vmatprep.subr.bf16.mxu0 %v1748_v8  ;;  %v1764_v36 = vpack.c.bf16 %v237_v34, %v236_v33  ;;  %v348_v38 = vld [vmem:[#allocation5 + $0xd8] sm:$0xff]  ;;  %v238_v39 = vld [vmem:[#allocation5 + $0x70] sm:$0xff]  ;;  %v349_v43 = vld [vmem:[#allocation5 + $0xe0] sm:$0xff]  ;;  %p2165_p12 = por %p2164_p9, %p2163_p5 }
  0x74   : > { %v239_v40 = vld [vmem:[#allocation5 + $0x78] sm:$0xff]  ;;  %v1792_v41 = vpack.c.bf16 %v348_v38, %v347_v37  ;;  %v350_v44 = vld [vmem:[#allocation5 + $0xe8] sm:$0xff]  ;;  %v222_v47 = vld [vmem:[%s2443_s29 + $0x10] sm:$0xff] }
  0x75   : > { %1779 = vmatpush3.bf16.msra.mxu1 %v1776_v17  ;;  %v1768_v42 = vpack.c.bf16 %v239_v40, %v238_v39  ;;  %v1796_v45 = vpack.c.bf16 %v350_v44, %v349_v43  ;;  %v221_v46 = vld [vmem:[%s2443_s29 + $0x8] sm:$0xff]  ;;  %v223_v48 = vld [vmem:[%s2443_s29 + $0x18] sm:$0xff]  ;;  %v351_v49 = vld [vmem:[#allocation5 + $0xf0] sm:$0xff]  ;;  %p2166_p1 = pnand %p2165_p12, %p2159_p3 }
  0x76   : > { %1751 = vmatpush3.bf16.msra.mxu0 %v1748_v8  ;;  %1781 = vmatprep.subr.bf16.mxu1 %v1780_v23  ;;  %v352_v50 = vld [vmem:[#allocation5 + $0xf8] sm:$0xff]  ;;  %v451_v52 = vld [vmem:[#allocation5 + $0x100] sm:$0xff]  ;;  %v452_v53 = vld [vmem:[#allocation5 + $0x108] sm:$0xff] }
  0x77   : > { %1753 = vmatprep.subr.bf16.mxu0 %v1752_v18  ;;  %v1800_v51 = vpack.c.bf16 %v352_v50, %v351_v49  ;;  %v453_v54 = vld [vmem:[#allocation5 + $0x110] sm:$0xff]  ;;  %v1804_v55 = vpack.c.bf16 %v452_v53, %v451_v52  ;;  %v454_v56 = vld [vmem:[#allocation5 + $0x118] sm:$0xff]  ;;  %v455_v58 = vld [vmem:[#allocation5 + $0x120] sm:$0xff] }
  0x78   : > { %v1808_v57 = vpack.c.bf16 %v454_v56, %v453_v54  ;;  %v456_v59 = vld [vmem:[#allocation5 + $0x128] sm:$0xff]  ;;  %v457_v61 = vld [vmem:[#allocation5 + $0x130] sm:$0xff]  ;;  %v458_v62 = vld [vmem:[#allocation5 + $0x138] sm:$0xff] }
  0x79   : > { %1783 = vmatpush3.bf16.msra.mxu1 %v1780_v23  ;;  %v1812_v60 = vpack.c.bf16 %v456_v59, %v455_v58  ;;  %v1816_v63 = vpack.c.bf16 %v458_v62, %v457_v61  ;;  %v459_v0 = vld [vmem:[#allocation5 + $0x140] sm:$0xff]  ;;  %v460_v1 = vld [vmem:[#allocation5 + $0x148] sm:$0xff]  ;;  %v461_v3 = vld [vmem:[#allocation5 + $0x150] sm:$0xff] }
  0x7a   : > { %1755 = vmatpush3.bf16.msra.mxu0 %v1752_v18  ;;  %1785 = vmatprep.subr.bf16.mxu1 %v1784_v29  ;;  %v1820_v2 = vpack.c.bf16 %v460_v1, %v459_v0  ;;  %v462_v4 = vld [vmem:[#allocation5 + $0x158] sm:$0xff]  ;;  %v463_v6 = vld [vmem:[#allocation5 + $0x160] sm:$0xff]  ;;  %v464_v7 = vld [vmem:[#allocation5 + $0x168] sm:$0xff] }
  0x7b   : > { %1757 = vmatprep.subr.bf16.mxu0 %v1756_v24  ;;  %v1824_v5 = vpack.c.bf16 %v462_v4, %v461_v3  ;;  %v1828_v8 = vpack.c.bf16 %v464_v7, %v463_v6  ;;  %v1261_v9 = vld [vmem:[#allocation7] ss:$0 sm:$0xff]  ;;  %v465_v22 = vld [vmem:[#allocation5 + $0x170] sm:$0xff]  ;;  %v466_v23 = vld [vmem:[#allocation5 + $0x178] sm:$0xff] }
  0x7c   : > { %v565_v25 = vld [vmem:[#allocation5 + $0x180] sm:$0xff]  ;;  %v566_v26 = vld [vmem:[#allocation5 + $0x188] sm:$0xff]  ;;  %v567_v27 = vld [vmem:[#allocation5 + $0x190] sm:$0xff] }
  0x7d   : > { %1787 = vmatpush3.bf16.msra.mxu1 %v1784_v29  ;;  %v1836_v28 = vpack.c.bf16 %v566_v26, %v565_v25  ;;  %v568_v29 = vld [vmem:[#allocation5 + $0x198] sm:$0xff]  ;;  %v569_v31 = vld [vmem:[#allocation5 + $0x1a0] sm:$0xff]  ;;  %v570_v32 = vld [vmem:[#allocation5 + $0x1a8] sm:$0xff] }
  0x7e   : > { %1759 = vmatpush3.bf16.msra.mxu0 %v1756_v24  ;;  %1789 = vmatprep.subr.bf16.mxu1 %v1788_v35  ;;  %v1832_v24 = vpack.c.bf16 %v466_v23, %v465_v22  ;;  %v1844_v33 = vpack.c.bf16 %v570_v32, %v569_v31  ;;  %v571_v34 = vld [vmem:[#allocation5 + $0x1b0] sm:$0xff]  ;;  %v573_v37 = vld [vmem:[#allocation5 + $0x1c0] sm:$0xff]  ;;  %v574_v38 = vld [vmem:[#allocation5 + $0x1c8] sm:$0xff] }
  0x7f   : > { %1761 = vmatprep.subr.bf16.mxu0 %v1760_v30  ;;  %v1852_v39 = vpack.c.bf16 %v574_v38, %v573_v37  ;;  %v575_v40 = vld [vmem:[#allocation5 + $0x1d0] sm:$0xff]  ;;  %v577_v43 = vld [vmem:[#allocation5 + $0x1e0] sm:$0xff]  ;;  %v578_v44 = vld [vmem:[#allocation5 + $0x1e8] sm:$0xff] }
  0x80   : > { %v579_v59 = vld [vmem:[#allocation5 + $0x1f0] sm:$0xff]  ;;  %v675_v62 = vld [vmem:[#allocation5 + $0x200] sm:$0xff] }
  0x81   : > { %1791 = vmatpush3.bf16.msra.mxu1 %v1788_v35  ;;  %v572_v35 = vld [vmem:[#allocation5 + $0x1b8] sm:$0xff]  ;;  %v677_v0 = vld [vmem:[#allocation5 + $0x210] sm:$0xff]  ;;  %v679_v4 = vld [vmem:[#allocation5 + $0x220] sm:$0xff] }
  0x82   : > { %1763 = vmatpush3.bf16.msra.mxu0 %v1760_v30  ;;  %1793 = vmatprep.subr.bf16.mxu1 %v1792_v41  ;;  %v1840_v30 = vpack.c.bf16 %v568_v29, %v567_v27  ;;  %v681_v7 = vld [vmem:[#allocation5 + $0x230] sm:$0xff]  ;;  %v1264_v38 = vld [vmem:[#allocation7 + $0x3] ss:$0 sm:$0xff] }
  0x83   : > { %1765 = vmatprep.subr.bf16.mxu0 %v1764_v36  ;;  %v689_v32 = vld [vmem:[#allocation5 + $0x270] sm:$0xff] }
  0x84   : > { %v791_v37 = vld [vmem:[#allocation5 + $0x290] sm:$0xff] }
  0x85   : > { %1795 = vmatpush3.bf16.msra.mxu1 %v1792_v41  ;;  %v576_v41 = vld [vmem:[#allocation5 + $0x1d8] sm:$0xff] }
  0x86   : > { %1767 = vmatpush3.bf16.msra.mxu0 %v1764_v36  ;;  %1797 = vmatprep.subr.bf16.mxu1 %v1796_v45  ;;  %v1848_v36 = vpack.c.bf16 %v572_v35, %v571_v34  ;;  %v789_v35 = vld [vmem:[#allocation5 + $0x280] sm:$0xff] }
  0x87   : > { %1769 = vmatprep.subr.bf16.mxu0 %v1768_v42 }
  0x89   : > { %1799 = vmatpush3.bf16.msra.mxu1 %v1796_v45  ;;  %v1860_v45 = vpack.c.bf16 %v578_v44, %v577_v43  ;;  %v793_v43 = vld [vmem:[#allocation5 + $0x2a0] sm:$0xff]  ;;  %v794_v44 = vld [vmem:[#allocation5 + $0x2a8] sm:$0xff] }
  0x8a   : > { %1771 = vmatpush3.bf16.msra.mxu0 %v1768_v42  ;;  %1801 = vmatprep.subr.bf16.mxu1 %v1800_v51  ;;  %v1856_v42 = vpack.c.bf16 %v576_v41, %v575_v40  ;;  %v792_v40 = vld [vmem:[#allocation5 + $0x298] sm:$0xff] }
  0x8b   : > { %1805 = vmatprep.subr.bf16.mxu0 %v1804_v55 }
  0x8d   : > { %1469 = vmatmul.mubr.f32.vlgmr.msra.gmra.mrb[0].mxu0 %v221_v46  ;;  %1803 = vmatpush3.bf16.msra.mxu1 %v1800_v51  ;;  %v1262_v46 = vld [vmem:[#allocation7 + $0x1] ss:$0 sm:$0xff] }
  0x8e   : > { %1471 = vmatprep.mubr.f32.mxu0 %v222_v47  ;;  %1807 = vmatpush3.bf16.msra.mxu0 %v1804_v55 }
  0x8f   : > { %1809 = vmatprep.subr.bf16.mxu0 %v1808_v57  ;;  %1837 = vmatprep.subr.bf16.mxu1 %v1836_v28 }
  0x91   : > { %1472 = vmatmul.mubr.f32.gmra.mrb[2].mxu0 %v223_v48 }
  0x92   : > { %1811 = vmatpush3.bf16.msra.mxu0 %v1808_v57 }
  0x93   : > { %1813 = vmatprep.subr.bf16.mxu0 %v1812_v60 }
  0x96   : > { %1815 = vmatpush3.bf16.msra.mxu0 %v1812_v60  ;;  %v580_v60 = vld [vmem:[#allocation5 + $0x1f8] sm:$0xff] }
  0x97   : > { %1817 = vmatprep.subr.bf16.mxu0 %v1816_v63  ;;  %v1864_v61 = vpack.c.bf16 %v580_v60, %v579_v59  ;;  %v799_v59 = vld [vmem:[#allocation5 + $0x2d0] sm:$0xff]  ;;  %v800_v60 = vld [vmem:[#allocation5 + $0x2d8] sm:$0xff] }
  0x9a   : > { %1819 = vmatpush3.bf16.msra.mxu0 %v1816_v63  ;;  %v676_v63 = vld [vmem:[#allocation5 + $0x208] sm:$0xff] }
  0x9b   : > { %1821 = vmatprep.subr.bf16.mxu0 %v1820_v2  ;;  %v1868_v1 = vpack.c.bf16 %v676_v63, %v675_v62  ;;  %v801_v62 = vld [vmem:[#allocation5 + $0x2e0] sm:$0xff]  ;;  %v802_v63 = vld [vmem:[#allocation5 + $0x2e8] sm:$0xff] }
  0x9e   : > { %1823 = vmatpush3.bf16.msra.mxu0 %v1820_v2  ;;  %v678_v2 = vld [vmem:[#allocation5 + $0x218] sm:$0xff] }
  0x9f   : > { %1825 = vmatprep.subr.bf16.mxu0 %v1824_v5  ;;  %v1872_v3 = vpack.c.bf16 %v678_v2, %v677_v0  ;;  %v1924_v0 = vpack.c.bf16 %v802_v63, %v801_v62  ;;  %v804_v2 = vld [vmem:[#allocation5 + $0x2f8] sm:$0xff]  ;;  %v1266_v62 = vld [vmem:[#allocation7 + $0x5] ss:$0 sm:$0xff] }
  0xa2   : > { %1827 = vmatpush3.bf16.msra.mxu0 %v1824_v5  ;;  %v680_v5 = vld [vmem:[#allocation5 + $0x228] sm:$0xff] }
  0xa3   : > { %1829 = vmatprep.subr.bf16.mxu0 %v1828_v8  ;;  %v1876_v6 = vpack.c.bf16 %v680_v5, %v679_v4  ;;  %v903_v4 = vld [vmem:[#allocation5 + $0x300] sm:$0xff]  ;;  %v904_v5 = vld [vmem:[#allocation5 + $0x308] sm:$0xff] }
  0xa6   : > { %1831 = vmatpush3.bf16.msra.mxu0 %v1828_v8  ;;  %v682_v8 = vld [vmem:[#allocation5 + $0x238] sm:$0xff] }
  0xa7   : > { %1833 = vmatprep.subr.bf16.mxu0 %v1832_v24 }
  0xaa   : > { %1835 = vmatpush3.bf16.msra.mxu0 %v1832_v24 }
  0xab   : > { %1869 = vmatprep.subr.bf16.mxu0 %v1868_v1 }
 0x160   : > { %v1470_v10 = vpop.f32.mrb[0].mxu0 }
 0x161   : > { %v319_v11 = vadd.f32 %v1470_v10, %v1261_v9  ;;  %v313_v12 = vpop.f32.mrb[1].mxu0  ;;  %v683_v10 = vld [vmem:[#allocation5 + $0x240] sm:$0xff] }
 0x162   : > { %v314_v13 = vadd.f32 %v1261_v9, %v313_v12 }
 0x163   : > { %v333_v16 = vmax.f32 %v319_v11, 0.0  ;;  %v684_v11 = vld [vmem:[#allocation5 + $0x248] sm:$0xff] }
 0x164   : > { %v1473_v14 = vpop.f32.mrb[2].mxu0  ;;  %v332_v15 = vmax.f32 %v314_v13, 0.0  ;;  %v1884_v12 = vpack.c.bf16 %v684_v11, %v683_v10  ;;  %v685_v13 = vld [vmem:[#allocation5 + $0x250] sm:$0xff]  ;;  %v907_v10 = vld [vmem:[#allocation5 + $0x320] sm:$0xff]  ;;  %v908_v11 = vld [vmem:[#allocation5 + $0x328] sm:$0xff] }
 0x165   : > { %v329_v17 = vadd.f32 %v1473_v14, %v1261_v9  ;;  %v323_v18 = vpop.f32.mrb[3].mxu0  ;;  %v686_v14 = vld [vmem:[#allocation5 + $0x258] sm:$0xff] }
 0x166   : > { %v324_v19 = vadd.f32 %v1261_v9, %v323_v18  ;;  %1506 = vmatprep.mubr.f32.mxu1 %v332_v15  ;;  %v1880_v9 = vpack.c.bf16 %v682_v8, %v681_v7  ;;  %v1888_v15 = vpack.c.bf16 %v686_v14, %v685_v13  ;;  %v1932_v7 = vpack.c.bf16 %v904_v5, %v903_v4  ;;  %v906_v8 = vld [vmem:[#allocation5 + $0x318] sm:$0xff]  ;;  %v909_v13 = vld [vmem:[#allocation5 + $0x330] sm:$0xff] }
 0x167   : > { %1507 = vmatmul.mubr.f32.vlgmr.msra.gmra.mrb[0].mxu1 %v333_v16  ;;  %v335_v21 = vmax.f32 %v329_v17, 0.0  ;;  %v687_v16 = vld [vmem:[#allocation5 + $0x260] sm:$0xff]  ;;  %v688_v17 = vld [vmem:[#allocation5 + $0x268] sm:$0xff]  ;;  %v910_v14 = vld [vmem:[#allocation5 + $0x338] sm:$0xff] }
 0x168   : > { %v334_v20 = vmax.f32 %v324_v19, 0.0  ;;  %1839 = vmatpush3.bf16.msra.mxu1 %v1836_v28  ;;  %v1892_v18 = vpack.c.bf16 %v688_v17, %v687_v16  ;;  %v1263_v19 = vld [vmem:[#allocation7 + $0x2] ss:$0 sm:$0xff]  ;;  %v912_v17 = vld [vmem:[#allocation5 + $0x348] sm:$0xff] }
 0x169   : > { %1841 = vmatprep.subr.bf16.mxu1 %v1840_v30  ;;  %v911_v16 = vld [vmem:[#allocation5 + $0x340] sm:$0xff] }
 0x16a   : > { %1509 = vmatprep.mubr.f32.mxu1 %v334_v20 }
 0x16b   : > { %1510 = vmatmul.mubr.f32.gmra.mrb[2].mxu1 %v335_v21 }
 0x16c   : > { %1843 = vmatpush3.bf16.msra.mxu1 %v1840_v30 }
 0x16d   : > { %1845 = vmatprep.subr.bf16.mxu1 %v1844_v33 }
 0x170   : > { %1847 = vmatpush3.bf16.msra.mxu1 %v1844_v33  ;;  %v690_v33 = vld [vmem:[#allocation5 + $0x278] sm:$0xff] }
 0x171   : > { %1849 = vmatprep.subr.bf16.mxu1 %v1848_v36  ;;  %v1896_v34 = vpack.c.bf16 %v690_v33, %v689_v32 }
 0x174   : > { %1851 = vmatpush3.bf16.msra.mxu1 %v1848_v36  ;;  %v790_v36 = vld [vmem:[#allocation5 + $0x288] sm:$0xff] }
 0x175   : > { %1853 = vmatprep.subr.bf16.mxu1 %v1852_v39 }
 0x178   : > { %1855 = vmatpush3.bf16.msra.mxu1 %v1852_v39  ;;  %v1900_v39 = vpack.c.bf16 %v790_v36, %v789_v35 }
 0x179   : > { %1857 = vmatprep.subr.bf16.mxu1 %v1856_v42 }
 0x17c   : > { %1859 = vmatpush3.bf16.msra.mxu1 %v1856_v42  ;;  %v1904_v42 = vpack.c.bf16 %v792_v40, %v791_v37 }
 0x17d   : > { %1861 = vmatprep.subr.bf16.mxu1 %v1860_v45 }
 0x180   : > { %1863 = vmatpush3.bf16.msra.mxu1 %v1860_v45 }
 0x181   : > { %1865 = vmatprep.subr.bf16.mxu1 %v1864_v61 }
 0x184   : > { %1867 = vmatpush3.bf16.msra.mxu1 %v1864_v61  ;;  %v1920_v61 = vpack.c.bf16 %v800_v60, %v799_v59  ;;  %v1029_v59 = vld [vmem:[#allocation5 + $0x3e0] sm:$0xff]  ;;  %v1030_v60 = vld [vmem:[#allocation5 + $0x3e8] sm:$0xff] }
 0x185   : > { %1901 = vmatprep.subr.bf16.mxu1 %v1900_v39 }
 0x23a   : > { %v1508_v47 = vpop.f32.mrb[0].mxu1 }
 0x23b   : > { %v433_v48 = vadd.f32 %v1508_v47, %v1262_v46  ;;  %v427_v49 = vpop.f32.mrb[1].mxu1 }
 0x23c   : > { %v428_v50 = vadd.f32 %v1262_v46, %v427_v49 }
 0x23d   : > { %v447_v53 = vmax.f32 %v433_v48, 0.0  ;;  %v1908_v48 = vpack.c.bf16 %v794_v44, %v793_v43  ;;  %v1019_v43 = vld [vmem:[#allocation5 + $0x390] sm:$0xff] }
 0x23e   : > { %v446_v51 = vmax.f32 %v428_v50, 0.0  ;;  %v1511_v52 = vpop.f32.mrb[2].mxu1  ;;  %v795_v50 = vld [vmem:[#allocation5 + $0x2b0] sm:$0xff] }
 0x23f   : > { %v443_v54 = vadd.f32 %v1511_v52, %v1262_v46  ;;  %v437_v55 = vpop.f32.mrb[3].mxu1 }
 0x240   : > { %v438_v56 = vadd.f32 %v1262_v46, %v437_v55  ;;  %1544 = vmatprep.mubr.f32.mxu0 %v446_v51  ;;  %v796_v51 = vld [vmem:[#allocation5 + $0x2b8] sm:$0xff] }
 0x241   : > { %1545 = vmatmul.mubr.f32.vlgmr.msra.gmra.mrb[4].mxu0 %v447_v53  ;;  %v449_v58 = vmax.f32 %v443_v54, 0.0  ;;  %v1912_v54 = vpack.c.bf16 %v796_v51, %v795_v50  ;;  %v1023_v50 = vld [vmem:[#allocation5 + $0x3b0] sm:$0xff]  ;;  %v1024_v51 = vld [vmem:[#allocation5 + $0x3b8] sm:$0xff] }
 0x242   : > { %v448_v57 = vmax.f32 %v438_v56, 0.0  ;;  %1871 = vmatpush3.bf16.msra.mxu0 %v1868_v1  ;;  %v797_v56 = vld [vmem:[#allocation5 + $0x2c0] sm:$0xff]  ;;  %v803_v1 = vld [vmem:[#allocation5 + $0x2f0] sm:$0xff] }
 0x243   : > { %1873 = vmatprep.subr.bf16.mxu0 %v1872_v3 }
 0x244   : > { %1547 = vmatprep.mubr.f32.mxu0 %v448_v57  ;;  %v798_v57 = vld [vmem:[#allocation5 + $0x2c8] sm:$0xff] }
 0x245   : > { %1548 = vmatmul.mubr.f32.gmra.mrb[6].mxu0 %v449_v58  ;;  %v1916_v58 = vpack.c.bf16 %v798_v57, %v797_v56  ;;  %v1027_v56 = vld [vmem:[#allocation5 + $0x3d0] sm:$0xff]  ;;  %v1028_v57 = vld [vmem:[#allocation5 + $0x3d8] sm:$0xff] }
 0x246   : > { %1875 = vmatpush3.bf16.msra.mxu0 %v1872_v3  ;;  %v1928_v3 = vpack.c.bf16 %v804_v2, %v803_v1 }
 0x247   : > { %1877 = vmatprep.subr.bf16.mxu0 %v1876_v6 }
 0x24a   : > { %1879 = vmatpush3.bf16.msra.mxu0 %v1876_v6  ;;  %v905_v6 = vld [vmem:[#allocation5 + $0x310] sm:$0xff] }
 0x24b   : > { %1881 = vmatprep.subr.bf16.mxu0 %v1880_v9 }
 0x24e   : > { %1883 = vmatpush3.bf16.msra.mxu0 %v1880_v9  ;;  %v1936_v9 = vpack.c.bf16 %v906_v8, %v905_v6 }
 0x24f   : > { %1885 = vmatprep.subr.bf16.mxu0 %v1884_v12 }
 0x252   : > { %1887 = vmatpush3.bf16.msra.mxu0 %v1884_v12  ;;  %v1940_v12 = vpack.c.bf16 %v908_v11, %v907_v10  ;;  %v1031_v11 = vld [vmem:[#allocation5 + $0x3f0] sm:$0xff] }
 0x253   : > { %1889 = vmatprep.subr.bf16.mxu0 %v1888_v15 }
 0x256   : > { %1891 = vmatpush3.bf16.msra.mxu0 %v1888_v15  ;;  %v1944_v15 = vpack.c.bf16 %v910_v14, %v909_v13  ;;  %v1267_v14 = vld [vmem:[#allocation7 + $0x6] ss:$0 sm:$0xff] }
 0x257   : > { %1893 = vmatprep.subr.bf16.mxu0 %v1892_v18 }
 0x25a   : > { %1895 = vmatpush3.bf16.msra.mxu0 %v1892_v18  ;;  %v1948_v18 = vpack.c.bf16 %v912_v17, %v911_v16 }
 0x25b   : > { %1897 = vmatprep.subr.bf16.mxu0 %v1896_v34 }
 0x25e   : > { %1899 = vmatpush3.bf16.msra.mxu0 %v1896_v34 }
 0x25f   : > { %1933 = vmatprep.subr.bf16.mxu0 %v1932_v7 }
 0x314   : > { %v1546_v20 = vpop.f32.mrb[4].mxu0 }
 0x315   : > { %v547_v21 = vadd.f32 %v1546_v20, %v1263_v19  ;;  %v541_v22 = vpop.f32.mrb[5].mxu0  ;;  %v914_v20 = vld [vmem:[#allocation5 + $0x358] sm:$0xff] }
 0x316   : > { %v542_v23 = vadd.f32 %v1263_v19, %v541_v22  ;;  %v915_v22 = vld [vmem:[#allocation5 + $0x360] sm:$0xff] }
 0x317   : > { %v561_v26 = vmax.f32 %v547_v21, 0.0 }
 0x318   : > { %v560_v24 = vmax.f32 %v542_v23, 0.0  ;;  %v1549_v25 = vpop.f32.mrb[6].mxu0  ;;  %v916_v23 = vld [vmem:[#allocation5 + $0x368] sm:$0xff] }
 0x319   : > { %v557_v27 = vadd.f32 %v1549_v25, %v1263_v19  ;;  %v551_v28 = vpop.f32.mrb[7].mxu0  ;;  %v1265_v25 = vld [vmem:[#allocation7 + $0x4] ss:$0 sm:$0xff] }
 0x31a   : > { %v552_v29 = vadd.f32 %v1263_v19, %v551_v28  ;;  %1582 = vmatprep.mubr.f32.mxu1 %v560_v24  ;;  %v913_v19 = vld [vmem:[#allocation5 + $0x350] sm:$0xff]  ;;  %v1956_v24 = vpack.c.bf16 %v916_v23, %v915_v22 }
 0x31b   : > { %1583 = vmatmul.mubr.f32.vlgmr.msra.gmra.mrb[4].mxu1 %v561_v26  ;;  %v563_v31 = vmax.f32 %v557_v27, 0.0  ;;  %v1952_v21 = vpack.c.bf16 %v914_v20, %v913_v19 }
 0x31c   : > { %v562_v30 = vmax.f32 %v552_v29, 0.0  ;;  %1903 = vmatpush3.bf16.msra.mxu1 %v1900_v39  ;;  %v918_v39 = vld [vmem:[#allocation5 + $0x378] sm:$0xff] }
 0x31d   : > { %1905 = vmatprep.subr.bf16.mxu1 %v1904_v42 }
 0x31e   : > { %1585 = vmatprep.mubr.f32.mxu1 %v562_v30 }
 0x31f   : > { %1586 = vmatmul.mubr.f32.gmra.mrb[6].mxu1 %v563_v31 }
 0x320   : > { %1907 = vmatpush3.bf16.msra.mxu1 %v1904_v42  ;;  %v1018_v42 = vld [vmem:[#allocation5 + $0x388] sm:$0xff] }
 0x321   : > { %1909 = vmatprep.subr.bf16.mxu1 %v1908_v48 }
 0x324   : > { %1911 = vmatpush3.bf16.msra.mxu1 %v1908_v48  ;;  %v1022_v48 = vld [vmem:[#allocation5 + $0x3a8] sm:$0xff] }
 0x325   : > { %1913 = vmatprep.subr.bf16.mxu1 %v1912_v54 }
 0x328   : > { %1915 = vmatpush3.bf16.msra.mxu1 %v1912_v54  ;;  %v1026_v54 = vld [vmem:[#allocation5 + $0x3c8] sm:$0xff] }
 0x329   : > { %1917 = vmatprep.subr.bf16.mxu1 %v1916_v58 }
 0x32c   : > { %1919 = vmatpush3.bf16.msra.mxu1 %v1916_v58  ;;  %v1984_v58 = vpack.c.bf16 %v1028_v57, %v1027_v56 }
 0x32d   : > { %1921 = vmatprep.subr.bf16.mxu1 %v1920_v61 }
 0x330   : > { %1923 = vmatpush3.bf16.msra.mxu1 %v1920_v61  ;;  %v1988_v61 = vpack.c.bf16 %v1030_v60, %v1029_v59 }
 0x331   : > { %1925 = vmatprep.subr.bf16.mxu1 %v1924_v0 }
 0x334   : > { %1927 = vmatpush3.bf16.msra.mxu1 %v1924_v0 }
 0x335   : > { %1929 = vmatprep.subr.bf16.mxu1 %v1928_v3 }
 0x338   : > { %1931 = vmatpush3.bf16.msra.mxu1 %v1928_v3 }
 0x3ee   : > { %v1584_v41 = vpop.f32.mrb[4].mxu1 }
 0x3ef   : > { %v655_v45 = vpop.f32.mrb[5].mxu1  ;;  %v661_v47 = vadd.f32 %v1584_v41, %v1264_v38  ;;  %v1017_v41 = vld [vmem:[#allocation5 + $0x380] sm:$0xff] }
 0x3f0   : > { %v656_v46 = vadd.f32 %v1264_v38, %v655_v45  ;;  %v1964_v44 = vpack.c.bf16 %v1018_v42, %v1017_v41  ;;  %v1020_v45 = vld [vmem:[#allocation5 + $0x398] sm:$0xff] }
 0x3f2   : > { %v1587_v49 = vpop.f32.mrb[6].mxu1  ;;  %1126 = vrot.lane.b32.xlu0 %v656_v46, %s2235_s18  ;;  %1620 = vmatprep.mubr.f32.mxu0 %v656_v46  ;;  %v1968_v46 = vpack.c.bf16 %v1020_v45, %v1019_v43 }
 0x3f3   : > { %v665_v52 = vpop.f32.mrb[7].mxu1  ;;  %1621 = vmatmul.mubr.f32.vlgmr.msra.gmra.mrb[8].mxu0 %v661_v47  ;;  %v671_v55 = vadd.f32 %v1587_v49, %v1264_v38  ;;  %1965 = vmatprep.subr.bf16.mxu1 %v1964_v44 }
 0x3f4   : > { %v666_v53 = vadd.f32 %v1264_v38, %v665_v52  ;;  %1935 = vmatpush3.bf16.msra.mxu0 %v1932_v7  ;;  %v917_v38 = vld [vmem:[#allocation5 + $0x370] sm:$0xff]  ;;  %v1976_v52 = vpack.c.bf16 %v1024_v51, %v1023_v50 }
 0x3f5   : > { %1937 = vmatprep.subr.bf16.mxu0 %v1936_v9  ;;  %v1960_v40 = vpack.c.bf16 %v918_v39, %v917_v38 }
 0x3f6   : > { %1130 = vrot.lane.b32.xlu1 %v666_v53, %s2235_s18  ;;  %1128 = vrot.lane.b32.xlu0 %v661_v47, %s2235_s18  ;;  %v1021_v47 = vld [vmem:[#allocation5 + $0x3a0] sm:$0xff] }
 0x3f7   : > { %1623 = vmatprep.mubr.f32.mxu0 %v666_v53  ;;  %v1972_v49 = vpack.c.bf16 %v1022_v48, %v1021_v47  ;;  %v1025_v53 = vld [vmem:[#allocation5 + $0x3c0] sm:$0xff] }
 0x3f8   : > { %1624 = vmatmul.mubr.f32.gmra.mrb[10].mxu0 %v671_v55 }
 0x3f9   : > { %1939 = vmatpush3.bf16.msra.mxu0 %v1936_v9 }
 0x3fa   : > { %1132 = vrot.lane.b32.xlu1 %v671_v55, %s2235_s18  ;;  %1941 = vmatprep.subr.bf16.mxu0 %v1940_v12  ;;  %v1980_v55 = vpack.c.bf16 %v1026_v54, %v1025_v53 }
 0x3fd   : > { %1943 = vmatpush3.bf16.msra.mxu0 %v1940_v12  ;;  %v1032_v12 = vld [vmem:[#allocation5 + $0x3f8] sm:$0xff] }
 0x3fe   : > { %1945 = vmatprep.subr.bf16.mxu0 %v1944_v15  ;;  %v1992_v13 = vpack.c.bf16 %v1032_v12, %v1031_v11 }
 0x401   : > { %1947 = vmatpush3.bf16.msra.mxu0 %v1944_v15 }
 0x402   : > { %1949 = vmatprep.subr.bf16.mxu0 %v1948_v18 }
 0x405   : > { %1951 = vmatpush3.bf16.msra.mxu0 %v1948_v18 }
 0x406   : > { %1953 = vmatprep.subr.bf16.mxu0 %v1952_v21 }
 0x409   : > { %1955 = vmatpush3.bf16.msra.mxu0 %v1952_v21 }
 0x40a   : > { %1957 = vmatprep.subr.bf16.mxu0 %v1956_v24 }
 0x40d   : > { %1959 = vmatpush3.bf16.msra.mxu0 %v1956_v24 }
 0x40e   : > { %1961 = vmatprep.subr.bf16.mxu0 %v1960_v40 }
 0x411   : > { %1963 = vmatpush3.bf16.msra.mxu0 %v1960_v40 }
 0x4c6   : > { %v1622_v26 = vpop.f32.mrb[8].mxu0 }
 0x4c7   : > { %v771_v27 = vadd.f32 %v1622_v26, %v1265_v25  ;;  %v765_v28 = vpop.f32.mrb[9].mxu0 }
 0x4c8   : > { %v766_v29 = vadd.f32 %v1265_v25, %v765_v28  ;;  %v1268_v28 = vld [vmem:[#allocation7 + $0x7] ss:$0 sm:$0xff] }
 0x4c9   : > { %v785_v31 = vmax.f32 %v771_v27, 0.0  ;;  %v1127_v27 = vpop.permute.xlu0 %1126 }
 0x4ca   : > { %v784_v30 = vmax.f32 %v766_v29, 0.0 }
 0x4cb   : > { %v1625_v32 = vpop.f32.mrb[10].mxu0 }
 0x4cc   : > { %v781_v33 = vadd.f32 %v1625_v32, %v1265_v25  ;;  %v775_v34 = vpop.f32.mrb[11].mxu0  ;;  %1658 = vmatprep.mubr.f32.mxu1 %v784_v30  ;;  %v1131_v30 = vpop.permute.xlu1 %1130 }
 0x4cd   : > { %v776_v35 = vadd.f32 %v1265_v25, %v775_v34  ;;  %1659 = vmatmul.mubr.f32.vlgmr.msra.gmra.mrb[8].mxu1 %v785_v31 }
 0x4ce   : > { %v787_v37 = vmax.f32 %v781_v33, 0.0  ;;  %1967 = vmatpush3.bf16.msra.mxu1 %v1964_v44  ;;  %v1129_v33 = vpop.permute.xlu0 %1128 }
 0x4cf   : > { %v786_v36 = vmax.f32 %v776_v35, 0.0  ;;  %1969 = vmatprep.subr.bf16.mxu1 %v1968_v46 }
 0x4d0   : > { %v1133_v40 = vpop.permute.xlu1 %1132 }
 0x4d1   : > { %1661 = vmatprep.mubr.f32.mxu1 %v786_v36 }
 0x4d2   : > { %1662 = vmatmul.mubr.f32.gmra.mrb[10].mxu1 %v787_v37 }
 0x4d3   : > { %1971 = vmatpush3.bf16.msra.mxu1 %v1968_v46 }
 0x4d4   : > { %1973 = vmatprep.subr.bf16.mxu1 %v1972_v49 }
 0x4d7   : > { %1975 = vmatpush3.bf16.msra.mxu1 %v1972_v49 }
 0x4d8   : > { %1977 = vmatprep.subr.bf16.mxu1 %v1976_v52 }
 0x4db   : > { %1979 = vmatpush3.bf16.msra.mxu1 %v1976_v52 }
 0x4dc   : > { %1981 = vmatprep.subr.bf16.mxu1 %v1980_v55 }
 0x4df   : > { %1983 = vmatpush3.bf16.msra.mxu1 %v1980_v55 }
 0x4e0   : > { %1985 = vmatprep.subr.bf16.mxu1 %v1984_v58 }
 0x4e3   : > { %1987 = vmatpush3.bf16.msra.mxu1 %v1984_v58 }
 0x4e4   : > { %1989 = vmatprep.subr.bf16.mxu1 %v1988_v61 }
 0x4e7   : > { %1991 = vmatpush3.bf16.msra.mxu1 %v1988_v61 }
 0x4e8   : > { %1993 = vmatprep.subr.bf16.mxu1 %v1992_v13 }
 0x4eb   : > { %1995 = vmatpush3.bf16.msra.mxu1 %v1992_v13 }
 0x5a0   : > { %v1660_v63 = vpop.f32.mrb[8].mxu1 }
 0x5a1   : > { %v885_v0 = vadd.f32 %v1660_v63, %v1266_v62  ;;  %v879_v1 = vpop.f32.mrb[9].mxu1 }
 0x5a2   : > { %v880_v2 = vadd.f32 %v1266_v62, %v879_v1 }
 0x5a3   : > { %v899_v4 = vmax.f32 %v885_v0, 0.0 }
 0x5a4   : > { %v898_v3 = vmax.f32 %v880_v2, 0.0 }
 0x5a5   : > { %v1663_v5 = vpop.f32.mrb[10].mxu1 }
 0x5a6   : > { %v895_v6 = vadd.f32 %v1663_v5, %v1266_v62  ;;  %v889_v7 = vpop.f32.mrb[11].mxu1  ;;  %1696 = vmatprep.mubr.f32.mxu0 %v898_v3 }
 0x5a7   : > { %v890_v8 = vadd.f32 %v1266_v62, %v889_v7  ;;  %1697 = vmatmul.mubr.f32.vlgmr.msra.gmra.mrb[12].mxu0 %v899_v4 }
 0x5a8   : > { %v901_v10 = vmax.f32 %v895_v6, 0.0 }
 0x5a9   : > { %v900_v9 = vmax.f32 %v890_v8, 0.0 }
 0x5ab   : > { %1699 = vmatprep.mubr.f32.mxu0 %v900_v9 }
 0x5ac   : > { %1700 = vmatmul.mubr.f32.gmra.mrb[14].mxu0 %v901_v10 }
 0x67a   : > { %v1698_v15 = vpop.f32.mrb[12].mxu0 }
 0x67b   : > { %v999_v16 = vadd.f32 %v1698_v15, %v1267_v14  ;;  %v993_v17 = vpop.f32.mrb[13].mxu0 }
 0x67c   : > { %v994_v18 = vadd.f32 %v1267_v14, %v993_v17 }
 0x67d   : > { %v1013_v20 = vmax.f32 %v999_v16, 0.0 }
 0x67e   : > { %v1012_v19 = vmax.f32 %v994_v18, 0.0 }
 0x67f   : > { %v1701_v21 = vpop.f32.mrb[14].mxu0 }
 0x680   : > { %v1009_v22 = vadd.f32 %v1701_v21, %v1267_v14  ;;  %v1003_v23 = vpop.f32.mrb[15].mxu0  ;;  %1734 = vmatprep.mubr.f32.mxu1 %v1012_v19 }
 0x681   : > { %v1004_v24 = vadd.f32 %v1267_v14, %v1003_v23  ;;  %1735 = vmatmul.mubr.f32.vlgmr.msra.gmra.mrb[12].mxu1 %v1013_v20 }
 0x682   : > { %v1015_v26 = vmax.f32 %v1009_v22, 0.0 }
 0x683   : > { %v1014_v25 = vmax.f32 %v1004_v24, 0.0 }
 0x685   : > { %1737 = vmatprep.mubr.f32.mxu1 %v1014_v25 }
 0x686   : > { %1738 = vmatmul.mubr.f32.gmra.mrb[14].mxu1 %v1015_v26 }
 0x754   : > { %v1736_v29 = vpop.f32.mrb[12].mxu1 }
 0x755   : > { %v1113_v31 = vadd.f32 %v1736_v29, %v1268_v28  ;;  %v1107_v32 = vpop.f32.mrb[13].mxu1 }
 0x756   : > { %v1108_v34 = vadd.f32 %v1268_v28, %v1107_v32 }
 0x757   : > { %v1135_v35 = vadd.f32 %v1129_v33, %v1113_v31 }
 0x758   : > { %v1134_v36 = vadd.f32 %v1127_v27, %v1108_v34 }
 0x759   : > { %1139 = vst [vmem:[%s217_s20 + $0x8] sm:$0xff] %v1135_v35  ;;  %v1739_v37 = vpop.f32.mrb[14].mxu1 }
 0x75a   : > { %1138 = vst [vmem:[%s217_s20] sm:$0xff] %v1134_v36  ;;  %v1123_v38 = vadd.f32 %v1739_v37, %v1268_v28  ;;  %v1117_v39 = vpop.f32.mrb[15].mxu1 }
 0x75b   : > { %v1118_v41 = vadd.f32 %v1268_v28, %v1117_v39 }
 0x75c   : > { %v1137_v42 = vadd.f32 %v1133_v40, %v1123_v38 }
 0x75d   : > { %v1136_v43 = vadd.f32 %v1131_v30, %v1118_v41 }
 0x75e   : > { %1141 = vst [vmem:[%s217_s20 + $0x18] sm:$0xff] %v1137_v42 }
 0x75f   : > { %1140 = vst [vmem:[%s217_s20 + $0x10] sm:$0xff] %v1136_v43 }
 0x760   : > { %2169 = shalt.err (!%p2166_p1)
}
 0x761   : > { %s2170_s24 = scalar_lea.hbm %s2465_s30, 512  ;;  %s2174_s5 = scalar_lea.hbm %s2512_s3, 1024 }
 0x762   : > { %p2171_p13 = scmp.ne.s32.totalorder %s2465_s30, %s2170_s24  ;;  %p2175_p4 = scmp.lt.u32.totalorder %s2465_s30, %s2512_s3 }
 0x763   : > { %p2176_p7 = scmp.lt.u32.totalorder %s2174_s5, %s2170_s24  ;;  %p2178_p11 = scmp.lt.u32.totalorder %s2170_s24, %s2465_s30 }
 0x764   : > { %p2172_p6 = pnand %p2171_p13, %p2526_p0 }
 0x765   : > { %p2177_p8 = por %p2176_p7, %p2175_p4 }
 0x766   : > { %p2173_p10 = pneg %p2172_p6 }
 0x767   : > { %p2179_p2 = por %p2178_p11, %p2177_p8 }
 0x769   : > { %p2180_p3 = pnand %p2179_p2, %p2173_p10 }
 0x76b   : > { %2183 = shalt.err (!%p2180_p3)
}
 0x76c   : > { %s2237_s18 = smov 128   ;;  %s2238_s20 = smov 8  }
 0x76d   : > { %2006 = dma.vmem_to_hbm [thread:$0]  (%p2526_p0), %s2460_s7, 512, %s2465_s30, %s1143_s16, %s2237_s18, %s2237_s18, %s2238_s20  }
 0x76e PF: > { %s1171_s8 = sand.u32 1, %s2214_s12   ;;  %p2527_p5 = scmp.ne.s32.totalorder %s2517_s19, 0 }
 0x76f   : > { %p2528_p9 = scmp.ge.s32.totalorder %s2226_s15, 2  ;;  %s1172_s27 = scalar_lea.sflag [#allocation4], %s1171_s8 }
 0x771   : > { %p2020_p12 = pnand %p2528_p9, %p2527_p5 }
 0x773   : > { %2209 = dma.done.wait (!%p2020_p12), %s1172_s27, 512  }
 0x774   : > { %2211 = vsyncadd (!%p2020_p12), %s1172_s27, 4294966784  ;;  %p17_p1 = scmp.ge.s32.totalorder %s2372_s6, 4   ;;  %s2529_s12 = smov %s2218_s13 }
 0x775   : > { %s2530_s13 = smov %s2222_s14  ;;  %s2531_s14 = smov %s2381_s11 }
 0x776   : > { %s2532_s15 = smov %s2372_s6  ;;  %19 = sbr.rel (!%p17_p1) target bundleno = 6 (0x6), region = 99 }
 0x77d   :  { %1177 = vsyncpa [#allocation3], 1 }
 0x77e   :  { %1179 = vsyncpa [#allocation3 + $0x1], 1 }
 0x77f   :  { %1180 = vsyncpa [#allocation6], 1 }
 0x780   :  { %1181 = vsyncpa [#allocation4], 1 }
 0x781   :  { %1183 = vsyncpa [#allocation4 + $0x1], 1 }

</bundles_post_ra>
